<compile_context>
chip_gen: v5e
topology: v5e:2x2
jax: 0.10.0
libtpu: 0.0.40
codegen_flags: <defaults>
</compile_context>

<pallas_src>
import jax
import jax.numpy as jnp
from jax.experimental import pallas as pl
from jax.experimental.pallas import tpu as pltpu

LN_EPS = 1e-5    # nn.LayerNorm default
TILE_B = 512     # max batch rows per grid step
LANES = 128


def _round_up(x, m):
    return ((x + m - 1) // m) * m


def _layernorm_relu(x, gamma, beta):
    # One-pass LayerNorm over the feature (lane) axis + ReLU, in f32.
    # var = E[x^2] - mu^2 keeps the two cross-lane reductions independent.
    mean = jnp.mean(x, axis=-1, keepdims=True)
    mean_sq = jnp.mean(x * x, axis=-1, keepdims=True)
    var = jnp.maximum(mean_sq - mean * mean, 0.0)
    inv = jax.lax.rsqrt(var + LN_EPS)
    y = (x - mean) * inv * gamma + beta
    return jnp.maximum(y, 0.0)


def actor_kernel(
    state_ref,
    w1_ref, p1_ref,      # p*_ref: packed [3, D] = (bias, ln_gamma, ln_beta), f32
    w2_ref, p2_ref,
    w3_ref, p3_ref,
    wa_ref, ba_ref,      # wa: [fc3, A_pad] bf16, ba: [1, A_pad] f32
    out_ref,
):
    bf16 = jnp.bfloat16
    x = state_ref[...]               # f32 activations

    p1 = p1_ref[...]
    p2 = p2_ref[...]
    p3 = p3_ref[...]

    # fc1 -> ln1 -> relu   (bf16 MXU inputs, f32 accumulation)
    h = jnp.dot(x.astype(bf16), w1_ref[...],
                preferred_element_type=jnp.float32) + p1[0:1, :]
    h = _layernorm_relu(h, p1[1:2, :], p1[2:3, :])

    # fc2 -> ln2 -> relu
    h = jnp.dot(h.astype(bf16), w2_ref[...],
                preferred_element_type=jnp.float32) + p2[0:1, :]
    h = _layernorm_relu(h, p2[1:2, :], p2[2:3, :])

    # fc3 -> ln3 -> relu
    h = jnp.dot(h.astype(bf16), w3_ref[...],
                preferred_element_type=jnp.float32) + p3[0:1, :]
    h = _layernorm_relu(h, p3[1:2, :], p3[2:3, :])

    # action head: 100 * tanh(Linear(h)); lane-dense (padded to 128) store
    a = jnp.dot(h.astype(bf16), wa_ref[...],
                preferred_element_type=jnp.float32) + ba_ref[...]
    out_ref[...] = 100.0 * jnp.tanh(a)


@jax.jit
def actor_forward(state, params):
    (w1, p1, w2, p2, w3, p3, wa, ba) = params

    B, state_dim = state.shape
    action_dim = wa.shape[1]
    a_pad = _round_up(action_dim, LANES)          # lane-dense output width

    # Pad the (tiny) action head to 128 lanes; padded columns are zero and are
    # sliced away after the kernel.
    wa_p = jnp.pad(wa, ((0, 0), (0, a_pad - action_dim)))
    ba_p = jnp.pad(ba, ((0, 0), (0, a_pad - action_dim)))

    # Batch tiling: no explicit input padding — Pallas masks the ragged block.
    tile_b = min(TILE_B, _round_up(B, 8))
    nb = pl.cdiv(B, tile_b)

    # Constant index_maps -> weights/params DMA'd once, VMEM-resident.
    const2d = lambda a: pl.BlockSpec(a.shape, lambda i: (0, 0))

    out = pl.pallas_call(
        actor_kernel,
        out_shape=jax.ShapeDtypeStruct((B, a_pad), jnp.float32),
        grid_spec=pltpu.PrefetchScalarGridSpec(
            num_scalar_prefetch=0,
            grid=(nb,),
            in_specs=[
                pl.BlockSpec((tile_b, state_dim), lambda i: (i, 0)),   # state
                const2d(w1), const2d(p1),
                const2d(w2), const2d(p2),
                const2d(w3), const2d(p3),
                const2d(wa_p), const2d(ba_p),
            ],
            out_specs=pl.BlockSpec((tile_b, a_pad), lambda i: (i, 0)),
        ),
        compiler_params=pltpu.CompilerParams(
            dimension_semantics=("parallel",),       # batch tiles independent
            vmem_limit_bytes=48 * 1024 * 1024,       # headroom on v5e/v6e/v7x
        ),
    )(state, w1, p1, w2, p2, w3, p3, wa_p, ba_p)

    return out[:, :action_dim]


def init_params(key, state_dim, action_dim, fc1_dim, fc2_dim, fc3_dim):
    """Matches weight_init: Linear weight ~ N(0, 0.01), bias = 0.
    LayerNorm: weight = 1, bias = 0 (PyTorch default).
    Linear weights are stored transposed ([in, out]) in bf16; per-layer
    (bias, LN gamma, LN beta) are packed into one f32 [3, D] array."""
    ks = jax.random.split(key, 4)

    def linear_w(k, din, dout):
        w = 0.01 * jax.random.normal(k, (din, dout), dtype=jnp.float32)
        return w.astype(jnp.bfloat16)

    def packed(dout):
        return jnp.stack([
            jnp.zeros((dout,), jnp.float32),   # bias
            jnp.ones((dout,), jnp.float32),    # LN gamma
            jnp.zeros((dout,), jnp.float32),   # LN beta
        ], axis=0)                              # [3, D]

    w1 = linear_w(ks[0], state_dim, fc1_dim)
    w2 = linear_w(ks[1], fc1_dim, fc2_dim)
    w3 = linear_w(ks[2], fc2_dim, fc3_dim)
    wa = linear_w(ks[3], fc3_dim, action_dim)
    ba = jnp.zeros((1, action_dim), jnp.float32)

    return (w1, packed(fc1_dim), w2, packed(fc2_dim), w3, packed(fc3_dim), wa, ba)


def reference_forward(state, params):
    """Pure-JAX f32 reference (same bf16-stored weights, f32 math throughout)."""
    (w1, p1, w2, p2, w3, p3, wa, ba) = params
    f32 = lambda w: w.astype(jnp.float32)

    def ln(x, g, b):
        m = jnp.mean(x, axis=-1, keepdims=True)
        v = jnp.mean(jnp.square(x - m), axis=-1, keepdims=True)
        return (x - m) * jax.lax.rsqrt(v + LN_EPS) * g + b

    h = jax.nn.relu(ln(state @ f32(w1) + p1[0], p1[1], p1[2]))
    h = jax.nn.relu(ln(h @ f32(w2) + p2[0], p2[1], p2[2]))
    h = jax.nn.relu(ln(h @ f32(w3) + p3[0], p3[1], p3[2]))
    return 100.0 * jnp.tanh(h @ f32(wa) + ba)


if __name__ == "__main__":
    key = jax.random.PRNGKey(0)
    k_param, k_state = jax.random.split(key)

    batch = 2
    state_dim = 8
    action_dim = 4
    fc1_dim = fc2_dim = fc3_dim = 32

    params = init_params(k_param, state_dim, action_dim, fc1_dim, fc2_dim, fc3_dim)
    state = jax.random.normal(k_state, (batch, state_dim), dtype=jnp.float32)

    out = actor_forward(state, params)
    jax.block_until_ready(out)

    ref = reference_forward(state, params)
    assert out.shape == (batch, action_dim)
    # Kernel casts activations to bf16 before each matmul (f32 accumulate) and
    # uses one-pass LN variance -> small deviation from the f32 reference.
    assert jnp.allclose(out, ref, rtol=2e-2, atol=2e-1), "mismatch vs reference"

    print("KERNEL_OK")
</pallas_src>

<mosaic_0001>
module attributes {stable_mosaic.version = 11 : i64} {
  func.func @actor_kernel(%arg0: i32, %arg1: memref<8x8xf32, #tpu.memory_space<vmem>>, %arg2: memref<8x32xbf16, #tpu.memory_space<vmem>>, %arg3: memref<3x32xf32, #tpu.memory_space<vmem>>, %arg4: memref<32x32xbf16, #tpu.memory_space<vmem>>, %arg5: memref<3x32xf32, #tpu.memory_space<vmem>>, %arg6: memref<32x32xbf16, #tpu.memory_space<vmem>>, %arg7: memref<3x32xf32, #tpu.memory_space<vmem>>, %arg8: memref<32x128xbf16, #tpu.memory_space<vmem>>, %arg9: memref<1x128xf32, #tpu.memory_space<vmem>>, %arg10: memref<8x128xf32, #tpu.memory_space<vmem>>) attributes {dimension_semantics = [#tpu.dimension_semantics<parallel>], iteration_bounds = array<i64: 1>, scalar_prefetch = 0 : i64, scratch_operands = 0 : i64, tpu.core_type = #tpu.core_type<tc>, window_params = [{transform_indices = @transform_0, window_bounds = array<i64: 8, 8>}, {pipeline_mode = #tpu.pipeline_mode<synchronous>, transform_indices = @transform_1, window_bounds = array<i64: 8, 32>}, {pipeline_mode = #tpu.pipeline_mode<synchronous>, transform_indices = @transform_2, window_bounds = array<i64: 3, 32>}, {pipeline_mode = #tpu.pipeline_mode<synchronous>, transform_indices = @transform_3, window_bounds = array<i64: 32, 32>}, {pipeline_mode = #tpu.pipeline_mode<synchronous>, transform_indices = @transform_4, window_bounds = array<i64: 3, 32>}, {pipeline_mode = #tpu.pipeline_mode<synchronous>, transform_indices = @transform_5, window_bounds = array<i64: 32, 32>}, {pipeline_mode = #tpu.pipeline_mode<synchronous>, transform_indices = @transform_6, window_bounds = array<i64: 3, 32>}, {pipeline_mode = #tpu.pipeline_mode<synchronous>, transform_indices = @transform_7, window_bounds = array<i64: 32, 128>}, {pipeline_mode = #tpu.pipeline_mode<synchronous>, transform_indices = @transform_8, window_bounds = array<i64: 1, 128>}, {transform_indices = @transform_9, window_bounds = array<i64: 8, 128>}]} {
    %c0 = arith.constant 0 : index
    %c0_0 = arith.constant 0 : index
    %0 = vector.load %arg1[%c0, %c0_0] : memref<8x8xf32, #tpu.memory_space<vmem>>, vector<8x8xf32>
    %c0_1 = arith.constant 0 : index
    %c0_2 = arith.constant 0 : index
    %1 = vector.load %arg3[%c0_1, %c0_2] : memref<3x32xf32, #tpu.memory_space<vmem>>, vector<3x32xf32>
    %c0_3 = arith.constant 0 : index
    %c0_4 = arith.constant 0 : index
    %2 = vector.load %arg5[%c0_3, %c0_4] : memref<3x32xf32, #tpu.memory_space<vmem>>, vector<3x32xf32>
    %c0_5 = arith.constant 0 : index
    %c0_6 = arith.constant 0 : index
    %3 = vector.load %arg7[%c0_5, %c0_6] : memref<3x32xf32, #tpu.memory_space<vmem>>, vector<3x32xf32>
    %4 = arith.truncf %0 : vector<8x8xf32> to vector<8x8xbf16>
    %c0_7 = arith.constant 0 : index
    %c0_8 = arith.constant 0 : index
    %5 = vector.load %arg2[%c0_7, %c0_8] : memref<8x32xbf16, #tpu.memory_space<vmem>>, vector<8x32xbf16>
    %cst = arith.constant dense<0.000000e+00> : vector<8x32xf32>
    %6 = tpu.matmul %4, %5, %cst {dimension_numbers = #tpu.dot_dimension_numbers<[1], [0], [0], [1], [0, 0, 1, 1], [], []>} : vector<8x8xbf16>, vector<8x32xbf16>, vector<8x32xf32> -> vector<8x32xf32>
    %7 = vector.extract_strided_slice %1 {offsets = [0, 0], sizes = [1, 32], strides = [1, 1]} : vector<3x32xf32> to vector<1x32xf32>
    %8 = vector.broadcast %7 : vector<1x32xf32> to vector<8x32xf32>
    %9 = arith.addf %6, %8 : vector<8x32xf32>
    %10 = vector.extract_strided_slice %1 {offsets = [1, 0], sizes = [1, 32], strides = [1, 1]} : vector<3x32xf32> to vector<1x32xf32>
    %11 = vector.extract_strided_slice %1 {offsets = [2, 0], sizes = [1, 32], strides = [1, 1]} : vector<3x32xf32> to vector<1x32xf32>
    %cst_9 = arith.constant dense<0.000000e+00> : vector<8xf32>
    %12 = vector.multi_reduction <add>, %9, %cst_9 [1] : vector<8x32xf32> to vector<8xf32>
    %13 = vector.shape_cast %12 : vector<8xf32> to vector<8x1xf32>
    %cst_10 = arith.constant 3.200000e+01 : f32
    %14 = vector.broadcast %cst_10 : f32 to vector<8x1xf32>
    %15 = arith.divf %13, %14 : vector<8x1xf32>
    %16 = arith.mulf %9, %9 : vector<8x32xf32>
    %cst_11 = arith.constant dense<0.000000e+00> : vector<8xf32>
    %17 = vector.multi_reduction <add>, %16, %cst_11 [1] : vector<8x32xf32> to vector<8xf32>
    %18 = vector.shape_cast %17 : vector<8xf32> to vector<8x1xf32>
    %cst_12 = arith.constant 3.200000e+01 : f32
    %19 = vector.broadcast %cst_12 : f32 to vector<8x1xf32>
    %20 = arith.divf %18, %19 : vector<8x1xf32>
    %21 = arith.mulf %15, %15 : vector<8x1xf32>
    %22 = arith.subf %20, %21 : vector<8x1xf32>
    %cst_13 = arith.constant 0.000000e+00 : f32
    %23 = vector.broadcast %cst_13 : f32 to vector<8x1xf32>
    %24 = arith.maximumf %22, %23 : vector<8x1xf32>
    %cst_14 = arith.constant 9.99999974E-6 : f32
    %25 = vector.broadcast %cst_14 : f32 to vector<8x1xf32>
    %26 = arith.addf %24, %25 : vector<8x1xf32>
    %27 = math.rsqrt %26 : vector<8x1xf32>
    %28 = vector.broadcast %15 : vector<8x1xf32> to vector<8x32xf32>
    %29 = arith.subf %9, %28 : vector<8x32xf32>
    %30 = vector.broadcast %27 : vector<8x1xf32> to vector<8x32xf32>
    %31 = arith.mulf %29, %30 : vector<8x32xf32>
    %32 = vector.broadcast %10 : vector<1x32xf32> to vector<8x32xf32>
    %33 = arith.mulf %31, %32 : vector<8x32xf32>
    %34 = vector.broadcast %11 : vector<1x32xf32> to vector<8x32xf32>
    %35 = arith.addf %33, %34 : vector<8x32xf32>
    %cst_15 = arith.constant 0.000000e+00 : f32
    %36 = vector.broadcast %cst_15 : f32 to vector<8x32xf32>
    %37 = arith.maximumf %35, %36 : vector<8x32xf32>
    %38 = arith.truncf %37 : vector<8x32xf32> to vector<8x32xbf16>
    %c0_16 = arith.constant 0 : index
    %c0_17 = arith.constant 0 : index
    %39 = vector.load %arg4[%c0_16, %c0_17] : memref<32x32xbf16, #tpu.memory_space<vmem>>, vector<32x32xbf16>
    %cst_18 = arith.constant dense<0.000000e+00> : vector<8x32xf32>
    %40 = tpu.matmul %38, %39, %cst_18 {dimension_numbers = #tpu.dot_dimension_numbers<[1], [0], [0], [1], [0, 0, 1, 1], [], []>} : vector<8x32xbf16>, vector<32x32xbf16>, vector<8x32xf32> -> vector<8x32xf32>
    %41 = vector.extract_strided_slice %2 {offsets = [0, 0], sizes = [1, 32], strides = [1, 1]} : vector<3x32xf32> to vector<1x32xf32>
    %42 = vector.broadcast %41 : vector<1x32xf32> to vector<8x32xf32>
    %43 = arith.addf %40, %42 : vector<8x32xf32>
    %44 = vector.extract_strided_slice %2 {offsets = [1, 0], sizes = [1, 32], strides = [1, 1]} : vector<3x32xf32> to vector<1x32xf32>
    %45 = vector.extract_strided_slice %2 {offsets = [2, 0], sizes = [1, 32], strides = [1, 1]} : vector<3x32xf32> to vector<1x32xf32>
    %cst_19 = arith.constant dense<0.000000e+00> : vector<8xf32>
    %46 = vector.multi_reduction <add>, %43, %cst_19 [1] : vector<8x32xf32> to vector<8xf32>
    %47 = vector.shape_cast %46 : vector<8xf32> to vector<8x1xf32>
    %cst_20 = arith.constant 3.200000e+01 : f32
    %48 = vector.broadcast %cst_20 : f32 to vector<8x1xf32>
    %49 = arith.divf %47, %48 : vector<8x1xf32>
    %50 = arith.mulf %43, %43 : vector<8x32xf32>
    %cst_21 = arith.constant dense<0.000000e+00> : vector<8xf32>
    %51 = vector.multi_reduction <add>, %50, %cst_21 [1] : vector<8x32xf32> to vector<8xf32>
    %52 = vector.shape_cast %51 : vector<8xf32> to vector<8x1xf32>
    %cst_22 = arith.constant 3.200000e+01 : f32
    %53 = vector.broadcast %cst_22 : f32 to vector<8x1xf32>
    %54 = arith.divf %52, %53 : vector<8x1xf32>
    %55 = arith.mulf %49, %49 : vector<8x1xf32>
    %56 = arith.subf %54, %55 : vector<8x1xf32>
    %cst_23 = arith.constant 0.000000e+00 : f32
    %57 = vector.broadcast %cst_23 : f32 to vector<8x1xf32>
    %58 = arith.maximumf %56, %57 : vector<8x1xf32>
    %cst_24 = arith.constant 9.99999974E-6 : f32
    %59 = vector.broadcast %cst_24 : f32 to vector<8x1xf32>
    %60 = arith.addf %58, %59 : vector<8x1xf32>
    %61 = math.rsqrt %60 : vector<8x1xf32>
    %62 = vector.broadcast %49 : vector<8x1xf32> to vector<8x32xf32>
    %63 = arith.subf %43, %62 : vector<8x32xf32>
    %64 = vector.broadcast %61 : vector<8x1xf32> to vector<8x32xf32>
    %65 = arith.mulf %63, %64 : vector<8x32xf32>
    %66 = vector.broadcast %44 : vector<1x32xf32> to vector<8x32xf32>
    %67 = arith.mulf %65, %66 : vector<8x32xf32>
    %68 = vector.broadcast %45 : vector<1x32xf32> to vector<8x32xf32>
    %69 = arith.addf %67, %68 : vector<8x32xf32>
    %cst_25 = arith.constant 0.000000e+00 : f32
    %70 = vector.broadcast %cst_25 : f32 to vector<8x32xf32>
    %71 = arith.maximumf %69, %70 : vector<8x32xf32>
    %72 = arith.truncf %71 : vector<8x32xf32> to vector<8x32xbf16>
    %c0_26 = arith.constant 0 : index
    %c0_27 = arith.constant 0 : index
    %73 = vector.load %arg6[%c0_26, %c0_27] : memref<32x32xbf16, #tpu.memory_space<vmem>>, vector<32x32xbf16>
    %cst_28 = arith.constant dense<0.000000e+00> : vector<8x32xf32>
    %74 = tpu.matmul %72, %73, %cst_28 {dimension_numbers = #tpu.dot_dimension_numbers<[1], [0], [0], [1], [0, 0, 1, 1], [], []>} : vector<8x32xbf16>, vector<32x32xbf16>, vector<8x32xf32> -> vector<8x32xf32>
    %75 = vector.extract_strided_slice %3 {offsets = [0, 0], sizes = [1, 32], strides = [1, 1]} : vector<3x32xf32> to vector<1x32xf32>
    %76 = vector.broadcast %75 : vector<1x32xf32> to vector<8x32xf32>
    %77 = arith.addf %74, %76 : vector<8x32xf32>
    %78 = vector.extract_strided_slice %3 {offsets = [1, 0], sizes = [1, 32], strides = [1, 1]} : vector<3x32xf32> to vector<1x32xf32>
    %79 = vector.extract_strided_slice %3 {offsets = [2, 0], sizes = [1, 32], strides = [1, 1]} : vector<3x32xf32> to vector<1x32xf32>
    %cst_29 = arith.constant dense<0.000000e+00> : vector<8xf32>
    %80 = vector.multi_reduction <add>, %77, %cst_29 [1] : vector<8x32xf32> to vector<8xf32>
    %81 = vector.shape_cast %80 : vector<8xf32> to vector<8x1xf32>
    %cst_30 = arith.constant 3.200000e+01 : f32
    %82 = vector.broadcast %cst_30 : f32 to vector<8x1xf32>
    %83 = arith.divf %81, %82 : vector<8x1xf32>
    %84 = arith.mulf %77, %77 : vector<8x32xf32>
    %cst_31 = arith.constant dense<0.000000e+00> : vector<8xf32>
    %85 = vector.multi_reduction <add>, %84, %cst_31 [1] : vector<8x32xf32> to vector<8xf32>
    %86 = vector.shape_cast %85 : vector<8xf32> to vector<8x1xf32>
    %cst_32 = arith.constant 3.200000e+01 : f32
    %87 = vector.broadcast %cst_32 : f32 to vector<8x1xf32>
    %88 = arith.divf %86, %87 : vector<8x1xf32>
    %89 = arith.mulf %83, %83 : vector<8x1xf32>
    %90 = arith.subf %88, %89 : vector<8x1xf32>
    %cst_33 = arith.constant 0.000000e+00 : f32
    %91 = vector.broadcast %cst_33 : f32 to vector<8x1xf32>
    %92 = arith.maximumf %90, %91 : vector<8x1xf32>
    %cst_34 = arith.constant 9.99999974E-6 : f32
    %93 = vector.broadcast %cst_34 : f32 to vector<8x1xf32>
    %94 = arith.addf %92, %93 : vector<8x1xf32>
    %95 = math.rsqrt %94 : vector<8x1xf32>
    %96 = vector.broadcast %83 : vector<8x1xf32> to vector<8x32xf32>
    %97 = arith.subf %77, %96 : vector<8x32xf32>
    %98 = vector.broadcast %95 : vector<8x1xf32> to vector<8x32xf32>
    %99 = arith.mulf %97, %98 : vector<8x32xf32>
    %100 = vector.broadcast %78 : vector<1x32xf32> to vector<8x32xf32>
    %101 = arith.mulf %99, %100 : vector<8x32xf32>
    %102 = vector.broadcast %79 : vector<1x32xf32> to vector<8x32xf32>
    %103 = arith.addf %101, %102 : vector<8x32xf32>
    %cst_35 = arith.constant 0.000000e+00 : f32
    %104 = vector.broadcast %cst_35 : f32 to vector<8x32xf32>
    %105 = arith.maximumf %103, %104 : vector<8x32xf32>
    %106 = arith.truncf %105 : vector<8x32xf32> to vector<8x32xbf16>
    %c0_36 = arith.constant 0 : index
    %c0_37 = arith.constant 0 : index
    %107 = vector.load %arg8[%c0_36, %c0_37] : memref<32x128xbf16, #tpu.memory_space<vmem>>, vector<32x128xbf16>
    %cst_38 = arith.constant dense<0.000000e+00> : vector<8x128xf32>
    %108 = tpu.matmul %106, %107, %cst_38 {dimension_numbers = #tpu.dot_dimension_numbers<[1], [0], [0], [1], [0, 0, 1, 1], [], []>} : vector<8x32xbf16>, vector<32x128xbf16>, vector<8x128xf32> -> vector<8x128xf32>
    %c0_39 = arith.constant 0 : index
    %c0_40 = arith.constant 0 : index
    %109 = vector.load %arg9[%c0_39, %c0_40] : memref<1x128xf32, #tpu.memory_space<vmem>>, vector<1x128xf32>
    %110 = vector.broadcast %109 : vector<1x128xf32> to vector<8x128xf32>
    %111 = arith.addf %108, %110 : vector<8x128xf32>
    %112 = math.tanh %111 : vector<8x128xf32>
    %cst_41 = arith.constant 1.000000e+02 : f32
    %113 = vector.broadcast %cst_41 : f32 to vector<8x128xf32>
    %114 = arith.mulf %113, %112 : vector<8x128xf32>
    %c0_42 = arith.constant 0 : index
    %c0_43 = arith.constant 0 : index
    %115 = vector.load %arg10[%c0_42, %c0_43] : memref<8x128xf32, #tpu.memory_space<vmem>>, vector<8x128xf32>
    tpu.vector_store %arg10[%c0_42, %c0_43], %114 {strides = array<i32>} : memref<8x128xf32, #tpu.memory_space<vmem>>, vector<8x128xf32>,
    return
  }
  func.func @transform_0(%arg0: i32) -> (i32, i32) {
    %c0_i32 = arith.constant 0 : i32
    %c0_i32_0 = arith.constant 0 : i32
    return %arg0, %c0_i32 : i32, i32
  }
  func.func @transform_1(%arg0: i32) -> (i32, i32) {
    %c0_i32 = arith.constant 0 : i32
    %c0_i32_0 = arith.constant 0 : i32
    %c0_i32_1 = arith.constant 0 : i32
    return %c0_i32, %c0_i32_0 : i32, i32
  }
  func.func @transform_2(%arg0: i32) -> (i32, i32) {
    %c0_i32 = arith.constant 0 : i32
    %c0_i32_0 = arith.constant 0 : i32
    %c0_i32_1 = arith.constant 0 : i32
    return %c0_i32, %c0_i32_0 : i32, i32
  }
  func.func @transform_3(%arg0: i32) -> (i32, i32) {
    %c0_i32 = arith.constant 0 : i32
    %c0_i32_0 = arith.constant 0 : i32
    %c0_i32_1 = arith.constant 0 : i32
    return %c0_i32, %c0_i32_0 : i32, i32
  }
  func.func @transform_4(%arg0: i32) -> (i32, i32) {
    %c0_i32 = arith.constant 0 : i32
    %c0_i32_0 = arith.constant 0 : i32
    %c0_i32_1 = arith.constant 0 : i32
    return %c0_i32, %c0_i32_0 : i32, i32
  }
  func.func @transform_5(%arg0: i32) -> (i32, i32) {
    %c0_i32 = arith.constant 0 : i32
    %c0_i32_0 = arith.constant 0 : i32
    %c0_i32_1 = arith.constant 0 : i32
    return %c0_i32, %c0_i32_0 : i32, i32
  }
  func.func @transform_6(%arg0: i32) -> (i32, i32) {
    %c0_i32 = arith.constant 0 : i32
    %c0_i32_0 = arith.constant 0 : i32
    %c0_i32_1 = arith.constant 0 : i32
    return %c0_i32, %c0_i32_0 : i32, i32
  }
  func.func @transform_7(%arg0: i32) -> (i32, i32) {
    %c0_i32 = arith.constant 0 : i32
    %c0_i32_0 = arith.constant 0 : i32
    %c0_i32_1 = arith.constant 0 : i32
    return %c0_i32, %c0_i32_0 : i32, i32
  }
  func.func @transform_8(%arg0: i32) -> (i32, i32) {
    %c0_i32 = arith.constant 0 : i32
    %c0_i32_0 = arith.constant 0 : i32
    %c0_i32_1 = arith.constant 0 : i32
    return %c0_i32, %c0_i32_0 : i32, i32
  }
  func.func @transform_9(%arg0: i32) -> (i32, i32) {
    %c0_i32 = arith.constant 0 : i32
    %c0_i32_0 = arith.constant 0 : i32
    return %arg0, %c0_i32 : i32, i32
  }
}

</mosaic_0001>

<bundles_post_ra>
// kernel: actor_forward.1
= control target key start
LH: loop header
LB: loop body
LE: loop exit
PB: predicated region body
PF: predicated region fallthrough
CT: control target
= control target key end

     0   :  { %14 = vsyncpa [#allocation3], 0  ;;  %vm45_vm0 = vcmask 1043456   ;;  %vm41_vm1 = vcmask 64512   ;;  %vm62_vm2 = vcmask 261120   ;;  %v361_v12 = vmov 32.0   ;;  %s471_s0 = inlined_call_operand.vmem [shape: f32[2,8], index: 0, kind: input, shape index: {}]   ;;  %s472_s1 = inlined_call_operand.vmem [shape: bf16[8,32], index: 1, kind: input, shape index: {}]   ;;  %s473_s2 = inlined_call_operand.vmem [shape: f32[3,32], index: 2, kind: input, shape index: {}]   ;;  %s474_s3 = inlined_call_operand.vmem [shape: bf16[32,32], index: 3, kind: input, shape index: {}]   ;;  %s475_s4 = inlined_call_operand.vmem [shape: f32[3,32], index: 4, kind: input, shape index: {}]   ;;  %s476_s5 = inlined_call_operand.vmem [shape: bf16[32,32], index: 5, kind: input, shape index: {}]   ;;  %s477_s6 = inlined_call_operand.vmem [shape: f32[3,32], index: 6, kind: input, shape index: {}]   ;;  %s478_s7 = inlined_call_operand.vmem [shape: bf16[32,128], index: 7, kind: input, shape index: {}]   ;;  %s479_s8 = inlined_call_operand.vmem [shape: f32[1,128], index: 8, kind: input, shape index: {}]   ;;  %s480_s9 = inlined_call_operand.hbm [shape: f32[2,128], index: 9, kind: output, shape index: {}]  }
   0x1   :  { %v39_v0 = vld [vmem:[%s472_s1] sm:$0xf]  ;;  %325 = vrcp.f32 %v361_v12  ;;  %v315_v19 = vld [vmem:[%s474_s3 + $0x8] sm:$0xff] }
   0x2   :  { %v34_v1 = vld [vmem:[%s471_s0] sm:$0xff]  ;;  %v47_v2 = vsel %vm45_vm0, %v39_v0, 0  ;;  %127 = vmatpush.bf16.msra.mxu1 %v315_v19  ;;  %v317_v53 = vld [vmem:[%s476_s5 + $0x8] sm:$0xff] }
   0x3   :  { %v38_v3 = vpack.c.bf16 %v34_v1, %v34_v1  ;;  %56 = vmatpush.bf16.msra.mxu0 %v47_v2  ;;  %v35_v4 = vld [vmem:[%s473_s2] sm:$0x7]  ;;  %191 = vmatpush.bf16.msra.mxu2 %v317_v53 }
   0x4   :  { %v40_v5 = vperm.slane %v35_v4, 0  ;;  %v314_v21 = vld [vmem:[%s474_s3] sm:$0xff]  ;;  %v95_v35 = vperm.slane %v35_v4, 1  ;;  %v97_v39 = vperm.slane %v35_v4, 2 }
   0x5   :  { %v36_v44 = vld [vmem:[%s475_s4] sm:$0x7] }
   0x6   :  { %286 = vmatmul.msk.bf16.vlgmr.msra.gmra.mxu0 %vm41_vm1, %v38_v3  ;;  %128 = vmatpush.bf16.msra.mxu1 %v314_v21  ;;  %v105_v45 = vperm.slane %v36_v44, 0  ;;  %v316_v54 = vld [vmem:[%s476_s5] sm:$0xff]  ;;  %v159_v4 = vperm.slane %v36_v44, 1 }
   0x7   :  { %v326_v13 = vpop.eup %325  ;;  %192 = vmatpush.bf16.msra.mxu2 %v316_v54 }
   0x8   :  { %v67_v14 = vmul.f32 32.0, %v326_v13  ;;  %vm71_vm3 = vweird.f32 %v326_v13 }
   0xa   :  { %v68_v15 = vsub.f32 1.0, %v67_v14 }
   0xc   :  { %v69_v16 = vmul.f32 %v326_v13, %v68_v15 }
   0xe   :  { %v70_v17 = vadd.f32 %v326_v13, %v69_v16 }
  0x10   :  { %v429_v20 = vsel %vm71_vm3, %v326_v13, %v70_v17  ;;  %v37_v13 = vld [vmem:[%s477_s6] sm:$0x7] }
  0x11   :  { %v169_v14 = vperm.slane %v37_v13, 0 }
  0x83   :  { %v58_v6 = vpop.f32.mrf.mxu0 }
  0x84   :  { %v59_v7 = vadd.f32 %v58_v6, %v40_v5 }
  0x86   :  { %v63_v8 = vsel %vm62_vm2, %v59_v7, 0.0  ;;  %v74_v9 = vmul.f32 %v59_v7, %v59_v7 }
  0x87   :  { %64 = vadd.xlane.f32.xlu0 %v63_v8  ;;  %v161_v8 = vperm.slane %v36_v44, 2 }
  0x88   :  { %v75_v11 = vsel %vm62_vm2, %v74_v9, 0.0 }
  0x8b   :  { %v60_v10 = vpop.f32.mrf.mxu0 }
  0x8f   :  { %76 = vadd.xlane.f32.xlu0 %v75_v11 }
  0xfa   :  { %v65_v18 = vpop.xlane.xlu0 %64 }
  0xfb   :  { %v73_v22 = vmul.f32 %v429_v20, %v65_v18 }
  0xfd   :  { %v79_v24 = vmul.f32 %v73_v22, %v73_v22  ;;  %v93_v36 = vsub.f32 %v59_v7, %v73_v22 }
 0x102   :  { %v77_v23 = vpop.xlane.xlu0 %76 }
 0x103   :  { %v78_v25 = vmul.f32 %v77_v23, %v429_v20  ;;  %v319_v23 = vld [vmem:[%s478_s7 + $0x8] sm:$0xff] }
 0x104   :  { %258 = vmatpush.bf16.msra.mxu3 %v319_v23 }
 0x105   :  { %v80_v26 = vsub.f32 %v78_v25, %v79_v24  ;;  %v318_v24 = vld [vmem:[%s478_s7] sm:$0xff] }
 0x107   :  { %v81_v27 = vmax.f32 %v80_v26, 0.0 }
 0x108   :  { %259 = vmatpush.bf16.msra.mxu3 %v318_v24 }
 0x109   :  { %v82_v28 = vadd.f32 1e-05, %v81_v27 }
 0x10b   :  { %327 = vrsqrt.f32 %v82_v28  ;;  %vm89_vm5 = vweird.f32 %v82_v28 }
 0x111   :  { %v328_v29 = vpop.eup %327 }
 0x112   :  { %v84_v30 = vmul.f32 %v328_v29, %v82_v28  ;;  %vm90_vm4 = vweird.f32 %v328_v29 }
 0x113   :  { %vm91_vm6 = vmor %vm89_vm5, %vm90_vm4 }
 0x114   :  { %v85_v31 = vmul.f32 %v328_v29, %v84_v30 }
 0x116   :  { %v86_v32 = vmul.f32 0.5, %v85_v31 }
 0x118   :  { %v87_v33 = vsub.f32 1.5, %v86_v32 }
 0x11a   :  { %v88_v34 = vmul.f32 %v328_v29, %v87_v33 }
 0x11c   :  { %v92_v37 = vsel %vm91_vm6, %v328_v29, %v88_v34 }
 0x11d   :  { %v94_v38 = vmul.f32 %v93_v36, %v92_v37 }
 0x11f   :  { %v96_v40 = vmul.f32 %v95_v35, %v94_v38  ;;  %v223_v38 = vperm.slane %v37_v13, 1 }
 0x121   :  { %v98_v41 = vadd.f32 %v97_v39, %v96_v40 }
 0x123   :  { %v99_v42 = vmax.f32 %v98_v41, 0.0 }
 0x125   :  { %v100_v43 = vpack.c.bf16 %v99_v42, %v99_v42  ;;  %v225_v42 = vperm.slane %v37_v13, 2 }
 0x127   :  { %295 = vmatmul.msk.bf16.vlgmr.msra.gmra.mxu1 %vm62_vm2, %v100_v43 }
 0x1a4   :  { %v130_v46 = vpop.f32.mrf.mxu1 }
 0x1a5   :  { %v131_v47 = vadd.f32 %v130_v46, %v105_v45  ;;  %v324_v46 = vld [vmem:[%s479_s8] ss:$0 sm:$0xff] }
 0x1a7   :  { %v134_v48 = vsel %vm62_vm2, %v131_v47, 0.0  ;;  %v138_v49 = vmul.f32 %v131_v47, %v131_v47 }
 0x1a8   :  { %135 = vadd.xlane.f32.xlu1 %v134_v48 }
 0x1a9   :  { %v139_v51 = vsel %vm62_vm2, %v138_v49, 0.0 }
 0x1ac   :  { %v132_v50 = vpop.f32.mrf.mxu1 }
 0x1b0   :  { %140 = vadd.xlane.f32.xlu1 %v139_v51 }
 0x21b   :  { %v136_v52 = vpop.xlane.xlu1 %135 }
 0x21c   :  { %v137_v55 = vmul.f32 %v136_v52, %v429_v20 }
 0x21e   :  { %v143_v57 = vmul.f32 %v137_v55, %v137_v55  ;;  %v157_v5 = vsub.f32 %v131_v47, %v137_v55 }
 0x223   :  { %v141_v56 = vpop.xlane.xlu1 %140 }
 0x224   :  { %v142_v58 = vmul.f32 %v141_v56, %v429_v20 }
 0x226   :  { %v144_v59 = vsub.f32 %v142_v58, %v143_v57 }
 0x228   :  { %v145_v60 = vmax.f32 %v144_v59, 0.0 }
 0x22a   :  { %v146_v61 = vadd.f32 1e-05, %v145_v60 }
 0x22c   :  { %329 = vrsqrt.f32 %v146_v61  ;;  %vm153_vm8 = vweird.f32 %v146_v61 }
 0x232   :  { %v330_v62 = vpop.eup %329 }
 0x233   :  { %v148_v63 = vmul.f32 %v330_v62, %v146_v61  ;;  %vm154_vm7 = vweird.f32 %v330_v62 }
 0x234   :  { %vm155_vm9 = vmor %vm153_vm8, %vm154_vm7 }
 0x235   :  { %v149_v0 = vmul.f32 %v330_v62, %v148_v63 }
 0x237   :  { %v150_v1 = vmul.f32 0.5, %v149_v0 }
 0x239   :  { %v151_v2 = vsub.f32 1.5, %v150_v1 }
 0x23b   :  { %v152_v3 = vmul.f32 %v330_v62, %v151_v2 }
 0x23d   :  { %v156_v6 = vsel %vm155_vm9, %v330_v62, %v152_v3 }
 0x23e   :  { %v158_v7 = vmul.f32 %v157_v5, %v156_v6 }
 0x240   :  { %v160_v9 = vmul.f32 %v159_v4, %v158_v7 }
 0x242   :  { %v162_v10 = vadd.f32 %v161_v8, %v160_v9 }
 0x244   :  { %v163_v11 = vmax.f32 %v162_v10, 0.0 }
 0x246   :  { %v164_v12 = vpack.c.bf16 %v163_v11, %v163_v11 }
 0x248   :  { %304 = vmatmul.msk.bf16.vlgmr.msra.gmra.mxu2 %vm62_vm2, %v164_v12 }
 0x2cb   :  { %v194_v15 = vpop.f32.mrf.mxu2 }
 0x2cc   :  { %v195_v16 = vadd.f32 %v194_v15, %v169_v14 }
 0x2ce   :  { %v198_v17 = vsel %vm62_vm2, %v195_v16, 0.0  ;;  %v202_v18 = vmul.f32 %v195_v16, %v195_v16 }
 0x2cf   :  { %199 = vadd.xlane.f32.xlu2 %v198_v17 }
 0x2d0   :  { %v203_v21 = vsel %vm62_vm2, %v202_v18, 0.0 }
 0x2d3   :  { %v196_v19 = vpop.f32.mrf.mxu2 }
 0x2d7   :  { %204 = vadd.xlane.f32.xlu2 %v203_v21 }
 0x342   :  { %v200_v22 = vpop.xlane.xlu2 %199 }
 0x343   :  { %v201_v25 = vmul.f32 %v200_v22, %v429_v20 }
 0x345   :  { %v207_v27 = vmul.f32 %v201_v25, %v201_v25  ;;  %v221_v39 = vsub.f32 %v195_v16, %v201_v25 }
 0x34a   :  { %v205_v26 = vpop.xlane.xlu2 %204 }
 0x34b   :  { %v206_v28 = vmul.f32 %v205_v26, %v429_v20 }
 0x34d   :  { %v208_v29 = vsub.f32 %v206_v28, %v207_v27 }
 0x34f   :  { %v209_v30 = vmax.f32 %v208_v29, 0.0 }
 0x351   :  { %v210_v31 = vadd.f32 1e-05, %v209_v30 }
 0x353   :  { %331 = vrsqrt.f32 %v210_v31  ;;  %vm217_vm11 = vweird.f32 %v210_v31 }
 0x359   :  { %v332_v32 = vpop.eup %331 }
 0x35a   :  { %v212_v33 = vmul.f32 %v332_v32, %v210_v31  ;;  %vm218_vm10 = vweird.f32 %v332_v32 }
 0x35b   :  { %vm219_vm12 = vmor %vm217_vm11, %vm218_vm10 }
 0x35c   :  { %v213_v34 = vmul.f32 %v332_v32, %v212_v33 }
 0x35e   :  { %v214_v35 = vmul.f32 0.5, %v213_v34 }
 0x360   :  { %v215_v36 = vsub.f32 1.5, %v214_v35 }
 0x362   :  { %v216_v37 = vmul.f32 %v332_v32, %v215_v36 }
 0x364   :  { %v220_v40 = vsel %vm219_vm12, %v332_v32, %v216_v37 }
 0x365   :  { %v222_v41 = vmul.f32 %v221_v39, %v220_v40 }
 0x367   :  { %v224_v43 = vmul.f32 %v223_v38, %v222_v41 }
 0x369   :  { %v226_v20 = vadd.f32 %v225_v42, %v224_v43 }
 0x36b   :  { %v227_v44 = vmax.f32 %v226_v20, 0.0 }
 0x36d   :  { %v228_v45 = vpack.c.bf16 %v227_v44, %v227_v44 }
 0x36f   :  { %313 = vmatmul.msk.bf16.vlgmr.msra.gmra.mxu3 %vm62_vm2, %v228_v45 }
 0x3f2   :  { %v261_v47 = vpop.f32.mrf.mxu3 }
 0x3f3   :  { %v262_v48 = vadd.f32 %v324_v46, %v261_v47 }
 0x3f5   :  { %333 = vtanh.f32 %v262_v48 }
 0x3fa   :  { %v263_v49 = vpop.f32.mrf.mxu3 }
 0x3fb   :  { %v334_v50 = vpop.eup %333 }
 0x3fc   :  { %v266_v51 = vmul.f32 100.0, %v334_v50 }
 0x3fe   :  { %267 = vst [vmem:[#allocation2] sm:$0xff] %v266_v51 }
 0x3ff   :  { %271 = vsyncadd [#allocation3], 96  ;;  %s274_s27 = sshll.u32 %s480_s9, 4  ;;  %s362_s28 = smov [#allocation2]   ;;  %s275_s27 = int_to_ptr.hbm [resolvable:$true] %s274_s27 }
 0x400   :  { %s272_s29 = sshll.u32 %s362_s28, 4  ;;  %s363_s30 = smov 32   ;;  %s273_s29 = int_to_ptr.vmem [resolvable:$true] %s272_s29 }
 0x401   :  { %s364_s10 = smov 2  }
 0x402   :  { %280 = dma.vmem_to_hbm [thread:$0]  %s273_s29, 32, %s275_s27, [#allocation3], %s363_s30, %s363_s30, %s364_s10  }
 0x403   :  { %359 = dma.done.wait [#allocation3], 128  }
 0x404   :  { %360 = vsyncadd [#allocation3], 4294967168 }
 0x405   :  { %285 = vsyncpa [#allocation3], 1 }

</bundles_post_ra>
